<compile_context>
chip_gen: v6e
topology: v6e:2x2x1
jax: 0.10.0
libtpu: 0.0.40
codegen_flags: <defaults>
</compile_context>

<pallas_src>
import math
from typing import NamedTuple

import jax
import jax.numpy as jnp
from jax.experimental import pallas as pl
from jax.experimental.pallas import tpu as pltpu


def _round_up(x, m):
    return (x + m - 1) // m * m


def _cdiv(a, b):
    return (a + b - 1) // b


def _tpu_vmem_capacity():
    """Per-core VMEM capacity in bytes (128 MiB on v5e/v6e, 64 MiB on v7x)."""
    try:
        return int(pltpu.get_tpu_info().vmem_capacity_bytes)
    except Exception:
        return 64 << 20  # conservative fallback


class PreparedParams(NamedTuple):
    flat: tuple          # (W0, b0, ..., W_out, b_out) cast / lane-padded
    w_shapes: tuple      # ((din, dout_padded), ...)
    labels_p: int
    hidden_dim: int
    num_layers: int
    compute_dtype: object


def prepare_params(params, num_labels, compute_dtype=jnp.bfloat16):
    """Cast / lane-pad parameters ONCE (init-time in production, not per forward call).

    params: [(W0, b0), ..., (W_{L-1}, b_{L-1}), (W_out, b_out)], W_i shape [in, out]
    (transposed vs PyTorch so y = x @ W + b).  Biases stay f32 (added to f32 acc).
    """
    compute_dtype = jnp.dtype(compute_dtype)
    num_layers = len(params) - 1
    hidden_dim = int(params[-1][0].shape[0])
    labels_p = max(_round_up(num_labels, 128), 128)

    flat, w_shapes = [], []
    for li, (w, b) in enumerate(params):
        w_c = w.astype(compute_dtype)
        b_c = b.reshape(1, -1).astype(jnp.float32)
        if li == num_layers:  # out_proj: zero-pad label columns to lane-dense width
            w_c = jnp.pad(w_c, ((0, 0), (0, labels_p - num_labels)))
            b_c = jnp.pad(b_c, ((0, 0), (0, labels_p - num_labels)))
        flat.append(w_c)
        flat.append(b_c)
        w_shapes.append((int(w_c.shape[0]), int(w_c.shape[1])))
    return PreparedParams(tuple(flat), tuple(w_shapes), labels_p, hidden_dim,
                          num_layers, compute_dtype)


def _make_kernel(num_layers, return_embedding):
    """Fused MLP kernel: [x @ W_i + b_i -> tanh]*L -> h @ W_out + b_out."""

    def kernel(*refs):
        # refs = (x, w0, b0, ..., w_{L-1}, b_{L-1}, w_out, b_out, out[, emb])
        n_params = 2 * (num_layers + 1)
        x_ref = refs[0]
        param_refs = refs[1:1 + n_params]
        out_ref = refs[1 + n_params]
        emb_ref = refs[2 + n_params] if return_embedding else None

        compute_dtype = param_refs[0].dtype
        # In-kernel cast: x arrives in its storage dtype (no wrapper-side HBM pass).
        h = x_ref[...].astype(compute_dtype)
        for i in range(num_layers):
            w = param_refs[2 * i][...]
            b = param_refs[2 * i + 1][...]          # f32 [1, dout] -> broadcasts over batch
            acc = jnp.dot(h, w, preferred_element_type=jnp.float32) + b
            # Bias-add + tanh in f32 (EUP path); cast back to operand dtype for next MXU op.
            h = jnp.tanh(acc).astype(compute_dtype)
            # Dropout(p) in eval/inference mode == identity.
            # TODO(synk): training-mode dropout needs pltpu.prng_seed/prng_random_bits.

        if return_embedding:
            emb_ref[...] = h.astype(emb_ref.dtype)

        w_out = param_refs[n_params - 2][...]
        b_out = param_refs[n_params - 1][...]
        logits = jnp.dot(h, w_out, preferred_element_type=jnp.float32) + b_out
        out_ref[...] = logits.astype(out_ref.dtype)

    return kernel


def classification_head_forward(x, params, num_labels, return_embedding=False, *,
                                compute_dtype=jnp.bfloat16, out_dtype=None,
                                emb_dtype=None, block_b=None):
    """params: raw [(W, b), ...] list OR the result of prepare_params().

    compute_dtype: MXU operand dtype (bf16 recommended); accumulation is always f32.
    out_dtype: logits dtype (default: x.dtype).  emb_dtype: embedding output dtype
    (default: compute_dtype, halving the largest output stream).
    """
    if not isinstance(params, PreparedParams):
        params = prepare_params(params, num_labels, compute_dtype)
    prep = params
    compute_dtype = jnp.dtype(prep.compute_dtype)
    num_layers = prep.num_layers
    hidden_dim = prep.hidden_dim
    labels_p = prep.labels_p
    w_shapes = prep.w_shapes

    B, first_dim = x.shape
    out_dtype = jnp.dtype(out_dtype) if out_dtype is not None else x.dtype
    emb_dtype = jnp.dtype(emb_dtype) if emb_dtype is not None else compute_dtype

    # --- generation-aware tiling ---
    vmem_cap = _tpu_vmem_capacity()
    num_cores = 2 if vmem_cap <= (64 << 20) else 1   # v7x: 2 TC/chip, 64 MiB VMEM/TC
    if block_b is None:
        block_b = 512 if vmem_cap >= (128 << 20) else 256   # v5e/v6e vs v7x

    n_tiles = max(1, _cdiv(B, block_b))
    if num_cores > 1 and B >= 32:
        # Feed both TensorCores: at least (a multiple of) num_cores balanced batch tiles.
        n_tiles = _cdiv(max(n_tiles, num_cores), num_cores) * num_cores
    tb = _round_up(_cdiv(B, n_tiles), 16)            # balanced tiles -> minimal padding
    grid_b = _cdiv(B, tb)
    b_p = grid_b * tb

    # Pad batch rows only when needed; NO dtype cast here (cast happens in-kernel).
    x_in = jnp.pad(x, ((0, b_p - B), (0, 0))) if b_p != B else x

    x_bytes = jnp.dtype(x.dtype).itemsize
    c_bytes = compute_dtype.itemsize
    o_bytes = out_dtype.itemsize
    e_bytes = emb_dtype.itemsize
    max_dout = max(dout for _, dout in w_shapes)

    out_shapes = [jax.ShapeDtypeStruct((b_p, labels_p), out_dtype)]
    out_specs = [pl.BlockSpec((tb, labels_p), lambda i: (i, 0))]
    if return_embedding:
        out_shapes.append(jax.ShapeDtypeStruct((b_p, hidden_dim), emb_dtype))
        out_specs.append(pl.BlockSpec((tb, hidden_dim), lambda i: (i, 0)))

    kernel = _make_kernel(num_layers, return_embedding)

    def build_in_specs(weight_buffers):
        specs = [pl.BlockSpec((tb, first_dim), lambda i: (i, 0))]
        for din, dout in w_shapes:
            if weight_buffers == 1:
                # Constant index_map -> resident across all batch tiles; single-buffer so
                # they don't cost 2x VMEM (critical on v7x's 64 MiB VMEM).
                specs.append(pl.BlockSpec((din, dout), lambda i: (0, 0),
                                          pipeline_mode=pl.Buffered(1)))
                specs.append(pl.BlockSpec((1, dout), lambda i: (0, 0),
                                          pipeline_mode=pl.Buffered(1)))
            else:
                specs.append(pl.BlockSpec((din, dout), lambda i: (0, 0)))
                specs.append(pl.BlockSpec((1, dout), lambda i: (0, 0)))
        return specs

    def run(weight_buffers):
        # --- honest VMEM budget ---
        weight_bytes = sum(din * dout * c_bytes + dout * 4 for din, dout in w_shapes)
        act_tile_bytes = tb * (first_dim * x_bytes + labels_p * o_bytes
                               + (hidden_dim * e_bytes if return_embedding else 0))
        # f32 matmul accumulator + intermediate h copies (Mosaic internal scratch).
        scratch_bytes = 3 * tb * max_dout * 4
        vmem_needed = (weight_bytes * weight_buffers      # resident weights x buf count
                       + 2 * act_tile_bytes               # double-buffered x / out tiles
                       + scratch_bytes)
        # Leave ~16 MiB headroom below physical VMEM for compiler spill / internals.
        vmem_limit = int(min(max(vmem_needed + (8 << 20), 32 << 20),
                             vmem_cap - (16 << 20)))

        flops = 2 * b_p * sum(din * dout for din, dout in w_shapes)
        transcendentals = b_p * hidden_dim * num_layers
        bytes_accessed = int(b_p * first_dim * x_bytes + weight_bytes
                             + sum(math.prod(s.shape) * jnp.dtype(s.dtype).itemsize
                                   for s in out_shapes))
        cost = pl.CostEstimate(flops=int(flops),
                               transcendentals=int(transcendentals),
                               bytes_accessed=bytes_accessed)

        return pl.pallas_call(
            kernel,
            grid=(grid_b,),
            in_specs=build_in_specs(weight_buffers),
            out_specs=tuple(out_specs) if return_embedding else out_specs[0],
            out_shape=tuple(out_shapes) if return_embedding else out_shapes[0],
            compiler_params=pltpu.CompilerParams(
                dimension_semantics=("parallel",),   # batch tiles shard across v7x's 2 TCs
                vmem_limit_bytes=vmem_limit),
            cost_estimate=cost,
        )(x_in, *prep.flat)

    try:
        outs = run(weight_buffers=1)
    except Exception:
        # pl.Buffered(1) not supported by this JAX build -> fall back to default pipeline.
        outs = run(weight_buffers=2)

    if return_embedding:
        logits_p, emb_p = outs
        return logits_p[:B, :num_labels], emb_p[:B, :]
    return outs[:B, :num_labels]


def init_params(key, first_dim, hidden_dim, num_layers, num_labels, dtype=jnp.float32):
    """PyTorch-Linear-style init: U(-1/sqrt(fan_in), 1/sqrt(fan_in))."""
    params = []
    dims_in = [first_dim] + [hidden_dim] * (num_layers - 1)
    dims_out = [hidden_dim] * num_layers
    for din, dout in zip(dims_in, dims_out):
        key, kw, kb = jax.random.split(key, 3)
        bound = 1.0 / jnp.sqrt(jnp.array(din, dtype=jnp.float32))
        w = jax.random.uniform(kw, (din, dout), dtype, -bound, bound)
        b = jax.random.uniform(kb, (1, dout), dtype, -bound, bound)
        params.append((w, b))
    key, kw, kb = jax.random.split(key, 3)
    bound = 1.0 / jnp.sqrt(jnp.array(hidden_dim, dtype=jnp.float32))
    w = jax.random.uniform(kw, (hidden_dim, num_labels), dtype, -bound, bound)
    b = jax.random.uniform(kb, (1, num_labels), dtype, -bound, bound)
    params.append((w, b))
    return params


def reference_forward(x, params):
    """Pure-JAX reference for correctness check."""
    h = x
    for (w, b) in params[:-1]:
        h = jnp.tanh(h @ w + b)
    w, b = params[-1]
    return h @ w + b, h


if __name__ == "__main__":
    # Small shapes consistent with the module.
    B = 8
    first_dim = 32
    hidden_dim = 32
    num_layers = 2
    num_labels = 4
    dropout = 0.1  # eval mode -> identity

    key = jax.random.PRNGKey(0)
    key, kx = jax.random.split(key)
    x = jax.random.normal(kx, (B, first_dim), jnp.float32)
    params = init_params(key, first_dim, hidden_dim, num_layers, num_labels)

    ref_logits, ref_emb = reference_forward(x, params)

    # f32-operand path (tight check): params prepared once, reused across calls.
    prep_f32 = prepare_params(params, num_labels, compute_dtype=jnp.float32)
    logits, embedding = classification_head_forward(
        x, prep_f32, num_labels, return_embedding=True)
    logits = jax.block_until_ready(logits)
    embedding = jax.block_until_ready(embedding)
    assert logits.shape == (B, num_labels)
    assert embedding.shape == (B, hidden_dim)
    assert jnp.allclose(logits, ref_logits, atol=1e-5, rtol=1e-5)
    assert jnp.allclose(embedding, ref_emb, atol=1e-5, rtol=1e-5)

    # Logits-only path: no embedding output / HBM writeback.
    logits_only = jax.block_until_ready(
        classification_head_forward(x, prep_f32, num_labels, return_embedding=False))
    assert logits_only.shape == (B, num_labels)
    assert jnp.allclose(logits_only, ref_logits, atol=1e-5, rtol=1e-5)

    # Default production config: bf16 operands / f32 accumulation, raw params
    # (prepared internally), f32 logits.
    logits_bf16 = jax.block_until_ready(
        classification_head_forward(x, params, num_labels, return_embedding=False,
                                    out_dtype=jnp.float32))
    assert logits_bf16.shape == (B, num_labels)
    assert jnp.allclose(logits_bf16.astype(jnp.float32), ref_logits, atol=5e-2, rtol=5e-2)

    print("KERNEL_OK")
</pallas_src>

<mosaic_0001>
module attributes {stable_mosaic.version = 11 : i64} {
  func.func @kernel(%arg0: i32, %arg1: memref<16x32xf32, #tpu.memory_space<vmem>>, %arg2: memref<32x32xf32, #tpu.memory_space<vmem>>, %arg3: memref<1x32xf32, #tpu.memory_space<vmem>>, %arg4: memref<32x32xf32, #tpu.memory_space<vmem>>, %arg5: memref<1x32xf32, #tpu.memory_space<vmem>>, %arg6: memref<32x128xf32, #tpu.memory_space<vmem>>, %arg7: memref<1x128xf32, #tpu.memory_space<vmem>>, %arg8: memref<16x128xf32, #tpu.memory_space<vmem>>, %arg9: memref<16x32xf32, #tpu.memory_space<vmem>>) attributes {dimension_semantics = [#tpu.dimension_semantics<parallel>], iteration_bounds = array<i64: 1>, scalar_prefetch = 0 : i64, scratch_operands = 0 : i64, tpu.core_type = #tpu.core_type<tc>, window_params = [{transform_indices = @transform_0, window_bounds = array<i64: 16, 32>}, {pipeline_mode = #tpu.pipeline_mode<synchronous>, transform_indices = @transform_1, window_bounds = array<i64: 32, 32>}, {pipeline_mode = #tpu.pipeline_mode<synchronous>, transform_indices = @transform_2, window_bounds = array<i64: 1, 32>}, {pipeline_mode = #tpu.pipeline_mode<synchronous>, transform_indices = @transform_3, window_bounds = array<i64: 32, 32>}, {pipeline_mode = #tpu.pipeline_mode<synchronous>, transform_indices = @transform_4, window_bounds = array<i64: 1, 32>}, {pipeline_mode = #tpu.pipeline_mode<synchronous>, transform_indices = @transform_5, window_bounds = array<i64: 32, 128>}, {pipeline_mode = #tpu.pipeline_mode<synchronous>, transform_indices = @transform_6, window_bounds = array<i64: 1, 128>}, {transform_indices = @transform_7, window_bounds = array<i64: 16, 128>}, {transform_indices = @transform_8, window_bounds = array<i64: 16, 32>}]} {
    %c0 = arith.constant 0 : index
    %c0_0 = arith.constant 0 : index
    %0 = vector.load %arg1[%c0, %c0_0] : memref<16x32xf32, #tpu.memory_space<vmem>>, vector<16x32xf32>
    %c0_1 = arith.constant 0 : index
    %c0_2 = arith.constant 0 : index
    %1 = vector.load %arg2[%c0_1, %c0_2] : memref<32x32xf32, #tpu.memory_space<vmem>>, vector<32x32xf32>
    %c0_3 = arith.constant 0 : index
    %c0_4 = arith.constant 0 : index
    %2 = vector.load %arg3[%c0_3, %c0_4] : memref<1x32xf32, #tpu.memory_space<vmem>>, vector<1x32xf32>
    %cst = arith.constant dense<0.000000e+00> : vector<16x32xf32>
    %3 = tpu.matmul %0, %1, %cst {dimension_numbers = #tpu.dot_dimension_numbers<[1], [0], [0], [1], [0, 0, 1, 1], [], []>} : vector<16x32xf32>, vector<32x32xf32>, vector<16x32xf32> -> vector<16x32xf32>
    %4 = vector.broadcast %2 : vector<1x32xf32> to vector<16x32xf32>
    %5 = arith.addf %3, %4 : vector<16x32xf32>
    %6 = math.tanh %5 : vector<16x32xf32>
    %c0_5 = arith.constant 0 : index
    %c0_6 = arith.constant 0 : index
    %7 = vector.load %arg4[%c0_5, %c0_6] : memref<32x32xf32, #tpu.memory_space<vmem>>, vector<32x32xf32>
    %c0_7 = arith.constant 0 : index
    %c0_8 = arith.constant 0 : index
    %8 = vector.load %arg5[%c0_7, %c0_8] : memref<1x32xf32, #tpu.memory_space<vmem>>, vector<1x32xf32>
    %cst_9 = arith.constant dense<0.000000e+00> : vector<16x32xf32>
    %9 = tpu.matmul %6, %7, %cst_9 {dimension_numbers = #tpu.dot_dimension_numbers<[1], [0], [0], [1], [0, 0, 1, 1], [], []>} : vector<16x32xf32>, vector<32x32xf32>, vector<16x32xf32> -> vector<16x32xf32>
    %10 = vector.broadcast %8 : vector<1x32xf32> to vector<16x32xf32>
    %11 = arith.addf %9, %10 : vector<16x32xf32>
    %12 = math.tanh %11 : vector<16x32xf32>
    %c0_10 = arith.constant 0 : index
    %c0_11 = arith.constant 0 : index
    %13 = vector.load %arg9[%c0_10, %c0_11] : memref<16x32xf32, #tpu.memory_space<vmem>>, vector<16x32xf32>
    tpu.vector_store %arg9[%c0_10, %c0_11], %12 {strides = array<i32>} : memref<16x32xf32, #tpu.memory_space<vmem>>, vector<16x32xf32>,
    %c0_12 = arith.constant 0 : index
    %c0_13 = arith.constant 0 : index
    %14 = vector.load %arg6[%c0_12, %c0_13] : memref<32x128xf32, #tpu.memory_space<vmem>>, vector<32x128xf32>
    %c0_14 = arith.constant 0 : index
    %c0_15 = arith.constant 0 : index
    %15 = vector.load %arg7[%c0_14, %c0_15] : memref<1x128xf32, #tpu.memory_space<vmem>>, vector<1x128xf32>
    %cst_16 = arith.constant dense<0.000000e+00> : vector<16x128xf32>
    %16 = tpu.matmul %12, %14, %cst_16 {dimension_numbers = #tpu.dot_dimension_numbers<[1], [0], [0], [1], [0, 0, 1, 1], [], []>} : vector<16x32xf32>, vector<32x128xf32>, vector<16x128xf32> -> vector<16x128xf32>
    %17 = vector.broadcast %15 : vector<1x128xf32> to vector<16x128xf32>
    %18 = arith.addf %16, %17 : vector<16x128xf32>
    %c0_17 = arith.constant 0 : index
    %c0_18 = arith.constant 0 : index
    %19 = vector.load %arg8[%c0_17, %c0_18] : memref<16x128xf32, #tpu.memory_space<vmem>>, vector<16x128xf32>
    tpu.vector_store %arg8[%c0_17, %c0_18], %18 {strides = array<i32>} : memref<16x128xf32, #tpu.memory_space<vmem>>, vector<16x128xf32>,
    return
  }
  func.func @transform_0(%arg0: i32) -> (i32, i32) {
    %c0_i32 = arith.constant 0 : i32
    %c0_i32_0 = arith.constant 0 : i32
    return %arg0, %c0_i32 : i32, i32
  }
  func.func @transform_1(%arg0: i32) -> (i32, i32) {
    %c0_i32 = arith.constant 0 : i32
    %c0_i32_0 = arith.constant 0 : i32
    %c0_i32_1 = arith.constant 0 : i32
    return %c0_i32, %c0_i32_0 : i32, i32
  }
  func.func @transform_2(%arg0: i32) -> (i32, i32) {
    %c0_i32 = arith.constant 0 : i32
    %c0_i32_0 = arith.constant 0 : i32
    %c0_i32_1 = arith.constant 0 : i32
    return %c0_i32, %c0_i32_0 : i32, i32
  }
  func.func @transform_3(%arg0: i32) -> (i32, i32) {
    %c0_i32 = arith.constant 0 : i32
    %c0_i32_0 = arith.constant 0 : i32
    %c0_i32_1 = arith.constant 0 : i32
    return %c0_i32, %c0_i32_0 : i32, i32
  }
  func.func @transform_4(%arg0: i32) -> (i32, i32) {
    %c0_i32 = arith.constant 0 : i32
    %c0_i32_0 = arith.constant 0 : i32
    %c0_i32_1 = arith.constant 0 : i32
    return %c0_i32, %c0_i32_0 : i32, i32
  }
  func.func @transform_5(%arg0: i32) -> (i32, i32) {
    %c0_i32 = arith.constant 0 : i32
    %c0_i32_0 = arith.constant 0 : i32
    %c0_i32_1 = arith.constant 0 : i32
    return %c0_i32, %c0_i32_0 : i32, i32
  }
  func.func @transform_6(%arg0: i32) -> (i32, i32) {
    %c0_i32 = arith.constant 0 : i32
    %c0_i32_0 = arith.constant 0 : i32
    %c0_i32_1 = arith.constant 0 : i32
    return %c0_i32, %c0_i32_0 : i32, i32
  }
  func.func @transform_7(%arg0: i32) -> (i32, i32) {
    %c0_i32 = arith.constant 0 : i32
    %c0_i32_0 = arith.constant 0 : i32
    return %arg0, %c0_i32 : i32, i32
  }
  func.func @transform_8(%arg0: i32) -> (i32, i32) {
    %c0_i32 = arith.constant 0 : i32
    %c0_i32_0 = arith.constant 0 : i32
    return %arg0, %c0_i32 : i32, i32
  }
}

module attributes {stable_mosaic.version = 11 : i64} {
  func.func @kernel(%arg0: i32, %arg1: memref<16x32xf32, #tpu.memory_space<vmem>>, %arg2: memref<32x32xf32, #tpu.memory_space<vmem>>, %arg3: memref<1x32xf32, #tpu.memory_space<vmem>>, %arg4: memref<32x32xf32, #tpu.memory_space<vmem>>, %arg5: memref<1x32xf32, #tpu.memory_space<vmem>>, %arg6: memref<32x128xf32, #tpu.memory_space<vmem>>, %arg7: memref<1x128xf32, #tpu.memory_space<vmem>>, %arg8: memref<16x128xf32, #tpu.memory_space<vmem>>, %arg9: memref<16x32xf32, #tpu.memory_space<vmem>>) attributes {dimension_semantics = [#tpu.dimension_semantics<parallel>], iteration_bounds = array<i64: 1>, scalar_prefetch = 0 : i64, scratch_operands = 0 : i64, tpu.core_type = #tpu.core_type<tc>, window_params = [{transform_indices = @transform_0, window_bounds = array<i64: 16, 32>}, {pipeline_mode = #tpu.pipeline_mode<synchronous>, transform_indices = @transform_1, window_bounds = array<i64: 32, 32>}, {pipeline_mode = #tpu.pipeline_mode<synchronous>, transform_indices = @transform_2, window_bounds = array<i64: 1, 32>}, {pipeline_mode = #tpu.pipeline_mode<synchronous>, transform_indices = @transform_3, window_bounds = array<i64: 32, 32>}, {pipeline_mode = #tpu.pipeline_mode<synchronous>, transform_indices = @transform_4, window_bounds = array<i64: 1, 32>}, {pipeline_mode = #tpu.pipeline_mode<synchronous>, transform_indices = @transform_5, window_bounds = array<i64: 32, 128>}, {pipeline_mode = #tpu.pipeline_mode<synchronous>, transform_indices = @transform_6, window_bounds = array<i64: 1, 128>}, {transform_indices = @transform_7, window_bounds = array<i64: 16, 128>}, {transform_indices = @transform_8, window_bounds = array<i64: 16, 32>}]} {
    %c0 = arith.constant 0 : index
    %c0_0 = arith.constant 0 : index
    %0 = vector.load %arg1[%c0, %c0_0] : memref<16x32xf32, #tpu.memory_space<vmem>>, vector<16x32xf32>
    %c0_1 = arith.constant 0 : index
    %c0_2 = arith.constant 0 : index
    %1 = vector.load %arg2[%c0_1, %c0_2] : memref<32x32xf32, #tpu.memory_space<vmem>>, vector<32x32xf32>
    %c0_3 = arith.constant 0 : index
    %c0_4 = arith.constant 0 : index
    %2 = vector.load %arg3[%c0_3, %c0_4] : memref<1x32xf32, #tpu.memory_space<vmem>>, vector<1x32xf32>
    %cst = arith.constant dense<0.000000e+00> : vector<16x32xf32>
    %3 = tpu.matmul %0, %1, %cst {dimension_numbers = #tpu.dot_dimension_numbers<[1], [0], [0], [1], [0, 0, 1, 1], [], []>} : vector<16x32xf32>, vector<32x32xf32>, vector<16x32xf32> -> vector<16x32xf32>
    %4 = vector.broadcast %2 : vector<1x32xf32> to vector<16x32xf32>
    %5 = arith.addf %3, %4 : vector<16x32xf32>
    %6 = math.tanh %5 : vector<16x32xf32>
    %c0_5 = arith.constant 0 : index
    %c0_6 = arith.constant 0 : index
    %7 = vector.load %arg4[%c0_5, %c0_6] : memref<32x32xf32, #tpu.memory_space<vmem>>, vector<32x32xf32>
    %c0_7 = arith.constant 0 : index
    %c0_8 = arith.constant 0 : index
    %8 = vector.load %arg5[%c0_7, %c0_8] : memref<1x32xf32, #tpu.memory_space<vmem>>, vector<1x32xf32>
    %cst_9 = arith.constant dense<0.000000e+00> : vector<16x32xf32>
    %9 = tpu.matmul %6, %7, %cst_9 {dimension_numbers = #tpu.dot_dimension_numbers<[1], [0], [0], [1], [0, 0, 1, 1], [], []>} : vector<16x32xf32>, vector<32x32xf32>, vector<16x32xf32> -> vector<16x32xf32>
    %10 = vector.broadcast %8 : vector<1x32xf32> to vector<16x32xf32>
    %11 = arith.addf %9, %10 : vector<16x32xf32>
    %12 = math.tanh %11 : vector<16x32xf32>
    %c0_10 = arith.constant 0 : index
    %c0_11 = arith.constant 0 : index
    %13 = vector.load %arg9[%c0_10, %c0_11] : memref<16x32xf32, #tpu.memory_space<vmem>>, vector<16x32xf32>
    tpu.vector_store %arg9[%c0_10, %c0_11], %12 {strides = array<i32>} : memref<16x32xf32, #tpu.memory_space<vmem>>, vector<16x32xf32>,
    %c0_12 = arith.constant 0 : index
    %c0_13 = arith.constant 0 : index
    %14 = vector.load %arg6[%c0_12, %c0_13] : memref<32x128xf32, #tpu.memory_space<vmem>>, vector<32x128xf32>
    %c0_14 = arith.constant 0 : index
    %c0_15 = arith.constant 0 : index
    %15 = vector.load %arg7[%c0_14, %c0_15] : memref<1x128xf32, #tpu.memory_space<vmem>>, vector<1x128xf32>
    %cst_16 = arith.constant dense<0.000000e+00> : vector<16x128xf32>
    %16 = tpu.matmul %12, %14, %cst_16 {dimension_numbers = #tpu.dot_dimension_numbers<[1], [0], [0], [1], [0, 0, 1, 1], [], []>} : vector<16x32xf32>, vector<32x128xf32>, vector<16x128xf32> -> vector<16x128xf32>
    %17 = vector.broadcast %15 : vector<1x128xf32> to vector<16x128xf32>
    %18 = arith.addf %16, %17 : vector<16x128xf32>
    %c0_17 = arith.constant 0 : index
    %c0_18 = arith.constant 0 : index
    %19 = vector.load %arg8[%c0_17, %c0_18] : memref<16x128xf32, #tpu.memory_space<vmem>>, vector<16x128xf32>
    tpu.vector_store %arg8[%c0_17, %c0_18], %18 {strides = array<i32>} : memref<16x128xf32, #tpu.memory_space<vmem>>, vector<16x128xf32>,
    return
  }
  func.func @transform_0(%arg0: i32) -> (i32, i32) {
    %c0_i32 = arith.constant 0 : i32
    %c0_i32_0 = arith.constant 0 : i32
    return %arg0, %c0_i32 : i32, i32
  }
  func.func @transform_1(%arg0: i32) -> (i32, i32) {
    %c0_i32 = arith.constant 0 : i32
    %c0_i32_0 = arith.constant 0 : i32
    %c0_i32_1 = arith.constant 0 : i32
    return %c0_i32, %c0_i32_0 : i32, i32
  }
  func.func @transform_2(%arg0: i32) -> (i32, i32) {
    %c0_i32 = arith.constant 0 : i32
    %c0_i32_0 = arith.constant 0 : i32
    %c0_i32_1 = arith.constant 0 : i32
    return %c0_i32, %c0_i32_0 : i32, i32
  }
  func.func @transform_3(%arg0: i32) -> (i32, i32) {
    %c0_i32 = arith.constant 0 : i32
    %c0_i32_0 = arith.constant 0 : i32
    %c0_i32_1 = arith.constant 0 : i32
    return %c0_i32, %c0_i32_0 : i32, i32
  }
  func.func @transform_4(%arg0: i32) -> (i32, i32) {
    %c0_i32 = arith.constant 0 : i32
    %c0_i32_0 = arith.constant 0 : i32
    %c0_i32_1 = arith.constant 0 : i32
    return %c0_i32, %c0_i32_0 : i32, i32
  }
  func.func @transform_5(%arg0: i32) -> (i32, i32) {
    %c0_i32 = arith.constant 0 : i32
    %c0_i32_0 = arith.constant 0 : i32
    %c0_i32_1 = arith.constant 0 : i32
    return %c0_i32, %c0_i32_0 : i32, i32
  }
  func.func @transform_6(%arg0: i32) -> (i32, i32) {
    %c0_i32 = arith.constant 0 : i32
    %c0_i32_0 = arith.constant 0 : i32
    %c0_i32_1 = arith.constant 0 : i32
    return %c0_i32, %c0_i32_0 : i32, i32
  }
  func.func @transform_7(%arg0: i32) -> (i32, i32) {
    %c0_i32 = arith.constant 0 : i32
    %c0_i32_0 = arith.constant 0 : i32
    return %arg0, %c0_i32 : i32, i32
  }
  func.func @transform_8(%arg0: i32) -> (i32, i32) {
    %c0_i32 = arith.constant 0 : i32
    %c0_i32_0 = arith.constant 0 : i32
    return %arg0, %c0_i32 : i32, i32
  }
}

</mosaic_0001>

<bundles_post_ra>
// kernel: tpu_custom_call.1
= control target key start
LH: loop header
LB: loop body
LE: loop exit
PB: predicated region body
PF: predicated region fallthrough
CT: control target
= control target key end

     0   :  { %14 = vsyncpa [#allocation3], 0  ;;  %s719_s0 = inlined_call_operand.hbm [shape: f32[16,32], index: 0, kind: input, shape index: {}]   ;;  %s720_s1 = inlined_call_operand.hbm [shape: f32[32,32], index: 1, kind: input, shape index: {}]   ;;  %s721_s2 = inlined_call_operand.vmem [shape: f32[1,32], index: 2, kind: input, shape index: {}]   ;;  %s722_s3 = inlined_call_operand.hbm [shape: f32[32,32], index: 3, kind: input, shape index: {}]   ;;  %s723_s4 = inlined_call_operand.vmem [shape: f32[1,32], index: 4, kind: input, shape index: {}]   ;;  %s724_s5 = inlined_call_operand.hbm [shape: f32[32,128], index: 5, kind: input, shape index: {}]   ;;  %s725_s6 = inlined_call_operand.vmem [shape: f32[1,128], index: 6, kind: input, shape index: {}]   ;;  %s726_s7 = inlined_call_operand.hbm [shape: f32[16,128], index: 7, kind: output, shape index: {0}]   ;;  %s727_s8 = inlined_call_operand.hbm [shape: f32[16,32], index: 8, kind: output, shape index: {1}]  }
   0x1   :  { %15 = vsyncpa [#allocation6], 0 }
   0x2   :  { %16 = vsyncpa [#allocation9], 0 }
   0x3   :  { %17 = vsyncpa [#allocation4], 0 }
   0x4   :  { %18 = vsyncpa [#allocation12], 0  ;;  %s613_s27 = smov [#allocation5]   ;;  %s614_s29 = smov [#allocation2]  }
   0x5   :  { %s36_s28 = sshll.u32 %s613_s27, 4  ;;  %s24_s30 = sshll.u32 %s614_s29, 4  ;;  %s37_s28 = int_to_ptr.vmem [resolvable:$true] %s36_s28  ;;  %s25_s30 = int_to_ptr.vmem [resolvable:$true] %s24_s30 }
   0x6   :  { %s491_s9 = scalar_lea.vmem %s37_s28, 512  ;;  %p496_p1 = scmp.lt.s32.totalorder %s37_s28, %s37_s28 }
   0x7   :  { %p492_p0 = scmp.ne.s32.totalorder %s37_s28, %s491_s9  ;;  %p497_p2 = scmp.lt.s32.totalorder %s491_s9, %s491_s9 }
   0x9   :  { %p498_p3 = por %p497_p2, %p496_p1 }
   0xb   :  { %p499_p4 = pnand %p498_p3, %p492_p0 }
   0xd   :  { %502 = shalt.err (!%p499_p4)
}
   0xe   :  { %s615_s10 = smov 128   ;;  %s616_s11 = smov 8  }
   0xf   :  { %42 = dma.hbm_to_vmem [thread:$0]  %s720_s1, 512, %s37_s28, [#allocation6], %s615_s10, %s615_s10, %s616_s11  }
  0x10   :  { %s511_s14 = scalar_lea.vmem %s25_s30, 256  ;;  %p516_p6 = scmp.lt.s32.totalorder %s25_s30, %s25_s30 }
  0x11   :  { %p512_p5 = scmp.ne.s32.totalorder %s25_s30, %s511_s14  ;;  %p517_p7 = scmp.lt.s32.totalorder %s511_s14, %s511_s14 }
  0x13   :  { %p518_p8 = por %p517_p7, %p516_p6 }
  0x15   :  { %p519_p9 = pnand %p518_p8, %p512_p5 }
  0x17   :  { %522 = shalt.err (!%p519_p9)
}
  0x18   :  { %30 = dma.hbm_to_vmem [thread:$0]  %s719_s0, 256, %s25_s30, [#allocation3], %s615_s10, %s615_s10, %s616_s11  }
  0x19   :  { %s617_s17 = smov [#allocation7]   ;;  %s618_s19 = smov [#allocation8]  }
  0x1a   :  { %s50_s18 = sshll.u32 %s617_s17, 4  ;;  %s64_s20 = sshll.u32 %s618_s19, 4  ;;  %s51_s18 = int_to_ptr.vmem [resolvable:$true] %s50_s18  ;;  %s65_s20 = int_to_ptr.vmem [resolvable:$true] %s64_s20 }
  0x1b   :  { %s531_s1 = scalar_lea.vmem %s51_s18, 512  ;;  %p536_p11 = scmp.lt.s32.totalorder %s51_s18, %s51_s18 }
  0x1c   :  { %p532_p10 = scmp.ne.s32.totalorder %s51_s18, %s531_s1  ;;  %p537_p12 = scmp.lt.s32.totalorder %s531_s1, %s531_s1 }
  0x1e   :  { %p538_p13 = por %p537_p12, %p536_p11 }
  0x20   :  { %p539_p0 = pnand %p538_p13, %p532_p10 }
  0x22   :  { %542 = shalt.err (!%p539_p0)
}
  0x23   :  { %56 = dma.hbm_to_vmem [thread:$0]  %s722_s3, 512, %s51_s18, [#allocation6], %s615_s10, %s615_s10, %s616_s11  }
  0x24   :  { %s551_s0 = scalar_lea.vmem %s65_s20, 512  ;;  %p556_p2 = scmp.lt.s32.totalorder %s65_s20, %s65_s20 }
  0x25   :  { %p552_p1 = scmp.ne.s32.totalorder %s65_s20, %s551_s0  ;;  %p557_p3 = scmp.lt.s32.totalorder %s551_s0, %s551_s0 }
  0x27   :  { %p558_p4 = por %p557_p3, %p556_p2 }
  0x29   :  { %p559_p5 = pnand %p558_p4, %p552_p1 }
  0x2b   :  { %562 = shalt.err (!%p559_p5)
}
  0x2c   :  { %70 = dma.hbm_to_vmem [thread:$0]  %s724_s5, 512, %s65_s20, [#allocation9], %s615_s10, %s615_s10, %s616_s11  }
  0x2d   :  { %603 = dma.done.wait [#allocation3], 256  }
  0x2e   :  { %604 = vsyncadd [#allocation3], 4294967040 }
  0x2f   :  { %605 = dma.done.wait [#allocation6], 1024  }
  0x30   :  { %606 = vsyncadd [#allocation6], 4294966272 }
  0x31   :  { %607 = dma.done.wait [#allocation9], 512  }
  0x32   :  { %608 = vsyncadd [#allocation9], 4294966784  ;;  %vm98_vm0 = vcmask 261120   ;;  %v90_v0 = vld [vmem:[#allocation5 + $0x18] sm:$0xff]  ;;  %v89_v1 = vld [vmem:[#allocation5 + $0x10] sm:$0xff]  ;;  %s619_s26 = smov [#allocation11]  }
  0x33   :  { %434 = vmatprep.subr.mxu0 %v90_v0  ;;  %v85_v2 = vld [vmem:[#allocation2] sm:$0xff]  ;;  %v88_v3 = vld [vmem:[#allocation5 + $0x8] sm:$0xff]  ;;  %v87_v4 = vld [vmem:[#allocation5] sm:$0xff]  ;;  %s389_s27 = sshll.u32 %s619_s26, 4  ;;  %s390_s27 = int_to_ptr.vmem [resolvable:$true] %s389_s27 }
  0x34   :  { %435 = vmatpush3.msra.mxu0 %v90_v0  ;;  %442 = vmatprep.mubr.msk.f32.mxu0 %vm98_vm0, %v85_v2  ;;  %v86_v5 = vld [vmem:[#allocation2 + $0x8] sm:$0xff]  ;;  %v184_v7 = vld [vmem:[#allocation7 + $0x10] sm:$0xff]  ;;  %v183_v8 = vld [vmem:[#allocation7 + $0x8] sm:$0xff]  ;;  %p568_p7 = scmp.lt.s32.totalorder %s390_s27, %s390_s27 }
  0x35   :  { %436 = vmatprep.subr.mxu0 %v89_v1  ;;  %v185_v6 = vld [vmem:[#allocation7 + $0x18] sm:$0xff]  ;;  %v182_v9 = vld [vmem:[#allocation7] sm:$0xff]  ;;  %v407_v10 = vld [vmem:[%s721_s2] ss:$0 sm:$0xff] }
  0x36   :  { %437 = vmatpush3.msra.mxu0 %v89_v1  ;;  %445 = vmatprep.subr.mxu1 %v185_v6  ;;  %v281_v17 = vld [vmem:[#allocation8 + $0x18] sm:$0xff]  ;;  %v280_v18 = vld [vmem:[#allocation8 + $0x10] sm:$0xff]  ;;  %v279_v19 = vld [vmem:[#allocation8 + $0x8] sm:$0xff] }
  0x37   :  { %438 = vmatprep.subr.mxu0 %v88_v3  ;;  %446 = vmatpush3.msra.mxu1 %v185_v6  ;;  %v278_v20 = vld [vmem:[#allocation8] sm:$0xff]  ;;  %v410_v21 = vld [vmem:[%s723_s4] ss:$0 sm:$0xff]  ;;  %s563_s4 = scalar_lea.vmem %s390_s27, 256 }
  0x38   :  { %439 = vmatpush3.msra.mxu0 %v88_v3  ;;  %447 = vmatprep.subr.mxu1 %v184_v7  ;;  %p564_p6 = scmp.ne.s32.totalorder %s390_s27, %s563_s4  ;;  %p569_p8 = scmp.lt.s32.totalorder %s563_s4, %s563_s4 }
  0x39   :  { %440 = vmatprep.subr.mxu0 %v87_v4  ;;  %448 = vmatpush3.msra.mxu1 %v184_v7 }
  0x3a   :  { %441 = vmatpush3.msra.mxu0 %v87_v4  ;;  %449 = vmatprep.subr.mxu1 %v183_v8  ;;  %p570_p9 = por %p569_p8, %p568_p7 }
  0x3b   :  { %443 = vmatmul.mubr.msk.f32.vlgmr.msra.gmra.mxu0 %vm98_vm0, %v86_v5  ;;  %450 = vmatpush3.msra.mxu1 %v183_v8 }
  0x3c   :  { %451 = vmatprep.subr.mxu1 %v182_v9  ;;  %456 = vmatprep.subr.mxu0 %v281_v17  ;;  %p571_p10 = pnand %p570_p9, %p564_p6 }
  0x3d   :  { %452 = vmatpush3.msra.mxu1 %v182_v9  ;;  %457 = vmatpush3.msra.mxu0 %v281_v17 }
  0x3e   :  { %458 = vmatprep.subr.mxu0 %v280_v18 }
  0x3f   :  { %459 = vmatpush3.msra.mxu0 %v280_v18 }
  0x40   :  { %460 = vmatprep.subr.mxu0 %v279_v19 }
  0x41   :  { %461 = vmatpush3.msra.mxu0 %v279_v19 }
  0x42   :  { %462 = vmatprep.subr.mxu0 %v278_v20 }
  0x43   :  { %463 = vmatpush3.msra.mxu0 %v278_v20 }
  0xfb   :  { %v444_v11 = vpop.f32.mrf.mxu0 }
  0xfc   :  { %v177_v12 = vadd.f32 %v444_v11, %v407_v10 }
  0xfd   :  { %v171_v13 = vpop.f32.mrf.mxu0 }
  0xfe   :  { %v172_v14 = vadd.f32 %v407_v10, %v171_v13 }
 0x100   :  { %475 = vtanh.f32 %v172_v14 }
 0x101   :  { %477 = vtanh.f32 %v177_v12 }
 0x10d   :  { %v476_v15 = vpop.eup %475 }
 0x10e   :  { %v478_v16 = vpop.eup %477  ;;  %453 = vmatprep.mubr.msk.f32.mxu1 %vm98_vm0, %v476_v15 }
 0x10f   :  { %454 = vmatmul.mubr.msk.f32.vlgmr.msra.gmra.mxu1 %vm98_vm0, %v478_v16 }
 0x1cf   :  { %v455_v22 = vpop.f32.mrf.mxu1 }
 0x1d0   :  { %v271_v23 = vadd.f32 %v455_v22, %v410_v21 }
 0x1d1   :  { %v265_v24 = vpop.f32.mrf.mxu1 }
 0x1d2   :  { %479 = vtanh.f32 %v271_v23  ;;  %v266_v25 = vadd.f32 %v410_v21, %v265_v24 }
 0x1d4   :  { %481 = vtanh.f32 %v266_v25 }
 0x1df   :  { %v480_v26 = vpop.eup %479 }
 0x1e0   :  { %277 = vst.msk [vmem:[#allocation11 + $0x8] sm:$0xff] %vm98_vm0, %v480_v26 }
 0x1e1   :  { %v482_v27 = vpop.eup %481 }
 0x1e2   :  { %276 = vst.msk [vmem:[#allocation11] sm:$0xff] %vm98_vm0, %v482_v27  ;;  %464 = vmatprep.mubr.msk.f32.mxu0 %vm98_vm0, %v482_v27 }
 0x1e3   :  { %465 = vmatmul.mubr.msk.f32.vlgmr.msra.gmra.mxu0 %vm98_vm0, %v480_v26 }
 0x1e4   :  { %574 = shalt.err (!%p571_p10)
}
 0x1e5   :  { %395 = dma.vmem_to_hbm [thread:$0]  %s390_s27, 256, %s727_s8, [#allocation12], %s615_s10, %s615_s10, %s616_s11  }
 0x1e6   :  { %v413_v28 = vld [vmem:[%s725_s6] ss:$0 sm:$0xff]  ;;  %s620_s12 = smov [#allocation10]  }
 0x1e7   :  { %s377_s13 = sshll.u32 %s620_s12, 4  ;;  %s378_s13 = int_to_ptr.vmem [resolvable:$true] %s377_s13 }
 0x1e8   :  { %s583_s14 = scalar_lea.vmem %s378_s13, 256  ;;  %p588_p12 = scmp.lt.s32.totalorder %s378_s13, %s378_s13 }
 0x1e9   :  { %p584_p11 = scmp.ne.s32.totalorder %s378_s13, %s583_s14  ;;  %p589_p13 = scmp.lt.s32.totalorder %s583_s14, %s583_s14 }
 0x1eb   :  { %p590_p0 = por %p589_p13, %p588_p12 }
 0x1ed   :  { %p591_p1 = pnand %p590_p0, %p584_p11 }
 0x2a3   :  { %v466_v29 = vpop.f32.mrf.mxu0 }
 0x2a4   :  { %v367_v30 = vadd.f32 %v466_v29, %v413_v28 }
 0x2a5   :  { %v361_v31 = vpop.f32.mrf.mxu0 }
 0x2a6   :  { %371 = vst [vmem:[#allocation10 + $0x8] sm:$0xff] %v367_v30  ;;  %v362_v32 = vadd.f32 %v413_v28, %v361_v31 }
 0x2a8   :  { %370 = vst [vmem:[#allocation10] sm:$0xff] %v362_v32 }
 0x2a9   :  { %594 = shalt.err (!%p591_p1)
}
 0x2aa   :  { %383 = dma.vmem_to_hbm [thread:$0]  %s378_s13, 256, %s726_s7, [#allocation4], %s615_s10, %s615_s10, %s616_s11  }
 0x2ab   :  { %609 = dma.done.wait [#allocation4], 256  }
 0x2ac   :  { %610 = vsyncadd [#allocation4], 4294967040 }
 0x2ad   :  { %611 = dma.done.wait [#allocation12], 256  }
 0x2ae   :  { %612 = vsyncadd [#allocation12], 4294967040 }
 0x2af   :  { %402 = vsyncpa [#allocation3], 1 }
 0x2b0   :  { %403 = vsyncpa [#allocation6], 1 }
 0x2b1   :  { %404 = vsyncpa [#allocation9], 1 }
 0x2b2   :  { %405 = vsyncpa [#allocation4], 1 }
 0x2b3   :  { %406 = vsyncpa [#allocation12], 1 }

// kernel: tpu_custom_call.1
= control target key start
LH: loop header
LB: loop body
LE: loop exit
PB: predicated region body
PF: predicated region fallthrough
CT: control target
= control target key end

     0   :  { %14 = vsyncpa [#allocation3], 0  ;;  %s719_s0 = inlined_call_operand.hbm [shape: f32[16,32], index: 0, kind: input, shape index: {}]   ;;  %s720_s1 = inlined_call_operand.hbm [shape: f32[32,32], index: 1, kind: input, shape index: {}]   ;;  %s721_s2 = inlined_call_operand.vmem [shape: f32[1,32], index: 2, kind: input, shape index: {}]   ;;  %s722_s3 = inlined_call_operand.hbm [shape: f32[32,32], index: 3, kind: input, shape index: {}]   ;;  %s723_s4 = inlined_call_operand.vmem [shape: f32[1,32], index: 4, kind: input, shape index: {}]   ;;  %s724_s5 = inlined_call_operand.hbm [shape: f32[32,128], index: 5, kind: input, shape index: {}]   ;;  %s725_s6 = inlined_call_operand.vmem [shape: f32[1,128], index: 6, kind: input, shape index: {}]   ;;  %s726_s7 = inlined_call_operand.hbm [shape: f32[16,128], index: 7, kind: output, shape index: {0}]   ;;  %s727_s8 = inlined_call_operand.hbm [shape: f32[16,32], index: 8, kind: output, shape index: {1}]  }
   0x1   :  { %15 = vsyncpa [#allocation6], 0 }
   0x2   :  { %16 = vsyncpa [#allocation9], 0 }
   0x3   :  { %17 = vsyncpa [#allocation4], 0 }
   0x4   :  { %18 = vsyncpa [#allocation12], 0  ;;  %s613_s27 = smov [#allocation5]   ;;  %s614_s29 = smov [#allocation2]  }
   0x5   :  { %s36_s28 = sshll.u32 %s613_s27, 4  ;;  %s24_s30 = sshll.u32 %s614_s29, 4  ;;  %s37_s28 = int_to_ptr.vmem [resolvable:$true] %s36_s28  ;;  %s25_s30 = int_to_ptr.vmem [resolvable:$true] %s24_s30 }
   0x6   :  { %s491_s9 = scalar_lea.vmem %s37_s28, 512  ;;  %p496_p1 = scmp.lt.s32.totalorder %s37_s28, %s37_s28 }
   0x7   :  { %p492_p0 = scmp.ne.s32.totalorder %s37_s28, %s491_s9  ;;  %p497_p2 = scmp.lt.s32.totalorder %s491_s9, %s491_s9 }
   0x9   :  { %p498_p3 = por %p497_p2, %p496_p1 }
   0xb   :  { %p499_p4 = pnand %p498_p3, %p492_p0 }
   0xd   :  { %502 = shalt.err (!%p499_p4)
}
   0xe   :  { %s615_s10 = smov 128   ;;  %s616_s11 = smov 8  }
   0xf   :  { %42 = dma.hbm_to_vmem [thread:$0]  %s720_s1, 512, %s37_s28, [#allocation6], %s615_s10, %s615_s10, %s616_s11  }
  0x10   :  { %s511_s14 = scalar_lea.vmem %s25_s30, 256  ;;  %p516_p6 = scmp.lt.s32.totalorder %s25_s30, %s25_s30 }
  0x11   :  { %p512_p5 = scmp.ne.s32.totalorder %s25_s30, %s511_s14  ;;  %p517_p7 = scmp.lt.s32.totalorder %s511_s14, %s511_s14 }
  0x13   :  { %p518_p8 = por %p517_p7, %p516_p6 }
  0x15   :  { %p519_p9 = pnand %p518_p8, %p512_p5 }
  0x17   :  { %522 = shalt.err (!%p519_p9)
}
  0x18   :  { %30 = dma.hbm_to_vmem [thread:$0]  %s719_s0, 256, %s25_s30, [#allocation3], %s615_s10, %s615_s10, %s616_s11  }
  0x19   :  { %s617_s17 = smov [#allocation7]   ;;  %s618_s19 = smov [#allocation8]  }
  0x1a   :  { %s50_s18 = sshll.u32 %s617_s17, 4  ;;  %s64_s20 = sshll.u32 %s618_s19, 4  ;;  %s51_s18 = int_to_ptr.vmem [resolvable:$true] %s50_s18  ;;  %s65_s20 = int_to_ptr.vmem [resolvable:$true] %s64_s20 }
  0x1b   :  { %s531_s1 = scalar_lea.vmem %s51_s18, 512  ;;  %p536_p11 = scmp.lt.s32.totalorder %s51_s18, %s51_s18 }
  0x1c   :  { %p532_p10 = scmp.ne.s32.totalorder %s51_s18, %s531_s1  ;;  %p537_p12 = scmp.lt.s32.totalorder %s531_s1, %s531_s1 }
  0x1e   :  { %p538_p13 = por %p537_p12, %p536_p11 }
  0x20   :  { %p539_p0 = pnand %p538_p13, %p532_p10 }
  0x22   :  { %542 = shalt.err (!%p539_p0)
}
  0x23   :  { %56 = dma.hbm_to_vmem [thread:$0]  %s722_s3, 512, %s51_s18, [#allocation6], %s615_s10, %s615_s10, %s616_s11  }
  0x24   :  { %s551_s0 = scalar_lea.vmem %s65_s20, 512  ;;  %p556_p2 = scmp.lt.s32.totalorder %s65_s20, %s65_s20 }
  0x25   :  { %p552_p1 = scmp.ne.s32.totalorder %s65_s20, %s551_s0  ;;  %p557_p3 = scmp.lt.s32.totalorder %s551_s0, %s551_s0 }
  0x27   :  { %p558_p4 = por %p557_p3, %p556_p2 }
  0x29   :  { %p559_p5 = pnand %p558_p4, %p552_p1 }
  0x2b   :  { %562 = shalt.err (!%p559_p5)
}
  0x2c   :  { %70 = dma.hbm_to_vmem [thread:$0]  %s724_s5, 512, %s65_s20, [#allocation9], %s615_s10, %s615_s10, %s616_s11  }
  0x2d   :  { %603 = dma.done.wait [#allocation3], 256  }
  0x2e   :  { %604 = vsyncadd [#allocation3], 4294967040 }
  0x2f   :  { %605 = dma.done.wait [#allocation6], 1024  }
  0x30   :  { %606 = vsyncadd [#allocation6], 4294966272 }
  0x31   :  { %607 = dma.done.wait [#allocation9], 512  }
  0x32   :  { %608 = vsyncadd [#allocation9], 4294966784  ;;  %vm98_vm0 = vcmask 261120   ;;  %v90_v0 = vld [vmem:[#allocation5 + $0x18] sm:$0xff]  ;;  %v89_v1 = vld [vmem:[#allocation5 + $0x10] sm:$0xff]  ;;  %s619_s26 = smov [#allocation11]  }
  0x33   :  { %434 = vmatprep.subr.mxu0 %v90_v0  ;;  %v85_v2 = vld [vmem:[#allocation2] sm:$0xff]  ;;  %v88_v3 = vld [vmem:[#allocation5 + $0x8] sm:$0xff]  ;;  %v87_v4 = vld [vmem:[#allocation5] sm:$0xff]  ;;  %s389_s27 = sshll.u32 %s619_s26, 4  ;;  %s390_s27 = int_to_ptr.vmem [resolvable:$true] %s389_s27 }
  0x34   :  { %435 = vmatpush3.msra.mxu0 %v90_v0  ;;  %442 = vmatprep.mubr.msk.f32.mxu0 %vm98_vm0, %v85_v2  ;;  %v86_v5 = vld [vmem:[#allocation2 + $0x8] sm:$0xff]  ;;  %v184_v7 = vld [vmem:[#allocation7 + $0x10] sm:$0xff]  ;;  %v183_v8 = vld [vmem:[#allocation7 + $0x8] sm:$0xff]  ;;  %p568_p7 = scmp.lt.s32.totalorder %s390_s27, %s390_s27 }
  0x35   :  { %436 = vmatprep.subr.mxu0 %v89_v1  ;;  %v185_v6 = vld [vmem:[#allocation7 + $0x18] sm:$0xff]  ;;  %v182_v9 = vld [vmem:[#allocation7] sm:$0xff]  ;;  %v407_v10 = vld [vmem:[%s721_s2] ss:$0 sm:$0xff] }
  0x36   :  { %437 = vmatpush3.msra.mxu0 %v89_v1  ;;  %445 = vmatprep.subr.mxu1 %v185_v6  ;;  %v281_v17 = vld [vmem:[#allocation8 + $0x18] sm:$0xff]  ;;  %v280_v18 = vld [vmem:[#allocation8 + $0x10] sm:$0xff]  ;;  %v279_v19 = vld [vmem:[#allocation8 + $0x8] sm:$0xff] }
  0x37   :  { %438 = vmatprep.subr.mxu0 %v88_v3  ;;  %446 = vmatpush3.msra.mxu1 %v185_v6  ;;  %v278_v20 = vld [vmem:[#allocation8] sm:$0xff]  ;;  %v410_v21 = vld [vmem:[%s723_s4] ss:$0 sm:$0xff]  ;;  %s563_s4 = scalar_lea.vmem %s390_s27, 256 }
  0x38   :  { %439 = vmatpush3.msra.mxu0 %v88_v3  ;;  %447 = vmatprep.subr.mxu1 %v184_v7  ;;  %p564_p6 = scmp.ne.s32.totalorder %s390_s27, %s563_s4  ;;  %p569_p8 = scmp.lt.s32.totalorder %s563_s4, %s563_s4 }
  0x39   :  { %440 = vmatprep.subr.mxu0 %v87_v4  ;;  %448 = vmatpush3.msra.mxu1 %v184_v7 }
  0x3a   :  { %441 = vmatpush3.msra.mxu0 %v87_v4  ;;  %449 = vmatprep.subr.mxu1 %v183_v8  ;;  %p570_p9 = por %p569_p8, %p568_p7 }
  0x3b   :  { %443 = vmatmul.mubr.msk.f32.vlgmr.msra.gmra.mxu0 %vm98_vm0, %v86_v5  ;;  %450 = vmatpush3.msra.mxu1 %v183_v8 }
  0x3c   :  { %451 = vmatprep.subr.mxu1 %v182_v9  ;;  %456 = vmatprep.subr.mxu0 %v281_v17  ;;  %p571_p10 = pnand %p570_p9, %p564_p6 }
  0x3d   :  { %452 = vmatpush3.msra.mxu1 %v182_v9  ;;  %457 = vmatpush3.msra.mxu0 %v281_v17 }
  0x3e   :  { %458 = vmatprep.subr.mxu0 %v280_v18 }
  0x3f   :  { %459 = vmatpush3.msra.mxu0 %v280_v18 }
  0x40   :  { %460 = vmatprep.subr.mxu0 %v279_v19 }
  0x41   :  { %461 = vmatpush3.msra.mxu0 %v279_v19 }
  0x42   :  { %462 = vmatprep.subr.mxu0 %v278_v20 }
  0x43   :  { %463 = vmatpush3.msra.mxu0 %v278_v20 }
  0xfb   :  { %v444_v11 = vpop.f32.mrf.mxu0 }
  0xfc   :  { %v177_v12 = vadd.f32 %v444_v11, %v407_v10 }
  0xfd   :  { %v171_v13 = vpop.f32.mrf.mxu0 }
  0xfe   :  { %v172_v14 = vadd.f32 %v407_v10, %v171_v13 }
 0x100   :  { %475 = vtanh.f32 %v172_v14 }
 0x101   :  { %477 = vtanh.f32 %v177_v12 }
 0x10d   :  { %v476_v15 = vpop.eup %475 }
 0x10e   :  { %v478_v16 = vpop.eup %477  ;;  %453 = vmatprep.mubr.msk.f32.mxu1 %vm98_vm0, %v476_v15 }
 0x10f   :  { %454 = vmatmul.mubr.msk.f32.vlgmr.msra.gmra.mxu1 %vm98_vm0, %v478_v16 }
 0x1cf   :  { %v455_v22 = vpop.f32.mrf.mxu1 }
 0x1d0   :  { %v271_v23 = vadd.f32 %v455_v22, %v410_v21 }
 0x1d1   :  { %v265_v24 = vpop.f32.mrf.mxu1 }
 0x1d2   :  { %479 = vtanh.f32 %v271_v23  ;;  %v266_v25 = vadd.f32 %v410_v21, %v265_v24 }
 0x1d4   :  { %481 = vtanh.f32 %v266_v25 }
 0x1df   :  { %v480_v26 = vpop.eup %479 }
 0x1e0   :  { %277 = vst.msk [vmem:[#allocation11 + $0x8] sm:$0xff] %vm98_vm0, %v480_v26 }
 0x1e1   :  { %v482_v27 = vpop.eup %481 }
 0x1e2   :  { %276 = vst.msk [vmem:[#allocation11] sm:$0xff] %vm98_vm0, %v482_v27  ;;  %464 = vmatprep.mubr.msk.f32.mxu0 %vm98_vm0, %v482_v27 }
 0x1e3   :  { %465 = vmatmul.mubr.msk.f32.vlgmr.msra.gmra.mxu0 %vm98_vm0, %v480_v26 }
 0x1e4   :  { %574 = shalt.err (!%p571_p10)
}
 0x1e5   :  { %395 = dma.vmem_to_hbm [thread:$0]  %s390_s27, 256, %s727_s8, [#allocation12], %s615_s10, %s615_s10, %s616_s11  }
 0x1e6   :  { %v413_v28 = vld [vmem:[%s725_s6] ss:$0 sm:$0xff]  ;;  %s620_s12 = smov [#allocation10]  }
 0x1e7   :  { %s377_s13 = sshll.u32 %s620_s12, 4  ;;  %s378_s13 = int_to_ptr.vmem [resolvable:$true] %s377_s13 }
 0x1e8   :  { %s583_s14 = scalar_lea.vmem %s378_s13, 256  ;;  %p588_p12 = scmp.lt.s32.totalorder %s378_s13, %s378_s13 }
 0x1e9   :  { %p584_p11 = scmp.ne.s32.totalorder %s378_s13, %s583_s14  ;;  %p589_p13 = scmp.lt.s32.totalorder %s583_s14, %s583_s14 }
 0x1eb   :  { %p590_p0 = por %p589_p13, %p588_p12 }
 0x1ed   :  { %p591_p1 = pnand %p590_p0, %p584_p11 }
 0x2a3   :  { %v466_v29 = vpop.f32.mrf.mxu0 }
 0x2a4   :  { %v367_v30 = vadd.f32 %v466_v29, %v413_v28 }
 0x2a5   :  { %v361_v31 = vpop.f32.mrf.mxu0 }
 0x2a6   :  { %371 = vst [vmem:[#allocation10 + $0x8] sm:$0xff] %v367_v30  ;;  %v362_v32 = vadd.f32 %v413_v28, %v361_v31 }
 0x2a8   :  { %370 = vst [vmem:[#allocation10] sm:$0xff] %v362_v32 }
 0x2a9   :  { %594 = shalt.err (!%p591_p1)
}
 0x2aa   :  { %383 = dma.vmem_to_hbm [thread:$0]  %s378_s13, 256, %s726_s7, [#allocation4], %s615_s10, %s615_s10, %s616_s11  }
 0x2ab   :  { %609 = dma.done.wait [#allocation4], 256  }
 0x2ac   :  { %610 = vsyncadd [#allocation4], 4294967040 }
 0x2ad   :  { %611 = dma.done.wait [#allocation12], 256  }
 0x2ae   :  { %612 = vsyncadd [#allocation12], 4294967040 }
 0x2af   :  { %402 = vsyncpa [#allocation3], 1 }
 0x2b0   :  { %403 = vsyncpa [#allocation6], 1 }
 0x2b1   :  { %404 = vsyncpa [#allocation9], 1 }
 0x2b2   :  { %405 = vsyncpa [#allocation4], 1 }
 0x2b3   :  { %406 = vsyncpa [#allocation12], 1 }

</bundles_post_ra>
